<compile_context>
chip_gen: v7x
topology: tpu7x:2x2x1
jax: 0.10.0
libtpu: 0.0.40
codegen_flags: <defaults>
</compile_context>

<pallas_src>
import functools

import jax
import jax.numpy as jnp
from jax.experimental import pallas as pl
from jax.experimental.pallas import tpu as pltpu


def _round_up(x, m):
    return ((x + m - 1) // m) * m


# ---------------------------------------------------------------------------
# Pallas kernel: (tm, K) @ (K, tn) + bias on the MXU, f32 accumulation.
# ---------------------------------------------------------------------------
def _patch_proj_kernel(x_ref, w_ref, b_ref, o_ref):
    # x_ref: (tm, K) bf16   patch vectors
    # w_ref: (K, tn) bf16   flattened conv weight tile
    # b_ref: (1, tn) f32    bias tile
    # o_ref: (tm, tn)       output tile
    acc = jnp.dot(x_ref[...], w_ref[...], preferred_element_type=jnp.float32)
    o_ref[...] = (acc + b_ref[...]).astype(o_ref.dtype)


def patch_proj(xp, w, b, *, out_dtype=jnp.float32):
    """xp: (M, K), w: (K, E), b: (E,) -> (M, E) in out_dtype."""
    M, K = xp.shape
    Kw, E = w.shape
    assert K == Kw

    # --- M tiling: 256-row tiles (multiple of 256 for v6e/v7x MXU geometry,
    #     also a multiple of 128 for v5e). Small M collapses to one 16-aligned
    #     tile (bf16 sublane packing) instead of asserting divisibility.
    if M <= 256:
        tm = _round_up(M, 16)
        M_pad = tm
    else:
        tm = 256
        M_pad = _round_up(M, tm)

    # --- E tiling: lane-dense (multiple of 128) tiles, at most 512 wide, so
    #     output stores are unmasked and the weight tile stays small in VMEM.
    E_pad = _round_up(E, 128)
    tn = E_pad
    if E_pad > 512:
        for cand in (512, 384, 256, 128):
            if E_pad % cand == 0:
                tn = cand
                break

    if M_pad != M:
        xp = jnp.pad(xp, ((0, M_pad - M), (0, 0)))
    if E_pad != E:
        w = jnp.pad(w, ((0, 0), (0, E_pad - E)))
        b = jnp.pad(b, ((0, E_pad - E),))
    b2 = b.reshape(1, E_pad).astype(jnp.float32)

    # Explicit VMEM budget (double-buffered in/out tiles) with headroom, capped
    # so it always fits v7x's 64 MiB physical VMEM.
    tile_bytes = (
        2 * tm * K * xp.dtype.itemsize      # x tile, double-buffered
        + 2 * K * tn * w.dtype.itemsize     # weight tile, double-buffered
        + 2 * tn * 4                        # bias tile
        + 2 * tm * tn * 4                   # output tile, double-buffered
    )
    vmem_limit = int(min(max(4 * tile_bytes, 16 * 1024 * 1024), 64 * 1024 * 1024))

    # TODO(synk): K is kept untiled (single-pass matmul, no accumulator); for
    # very large C * patch-volume a K grid axis + VMEM f32 accumulator would be
    # needed to fit v7x's smaller VMEM.
    out = pl.pallas_call(
        _patch_proj_kernel,
        out_shape=jax.ShapeDtypeStruct((M_pad, E_pad), out_dtype),
        grid_spec=pltpu.PrefetchScalarGridSpec(
            num_scalar_prefetch=0,
            grid=(M_pad // tm, E_pad // tn),
            in_specs=[
                pl.BlockSpec((tm, K), lambda i, j: (i, 0)),
                pl.BlockSpec((K, tn), lambda i, j: (0, j)),
                pl.BlockSpec((1, tn), lambda i, j: (0, j)),
            ],
            out_specs=pl.BlockSpec((tm, tn), lambda i, j: (i, j)),
        ),
        compiler_params=pltpu.CompilerParams(
            dimension_semantics=("parallel", "parallel"),
            vmem_limit_bytes=vmem_limit,
        ),
    )(xp, w, b2)

    if M_pad != M or E_pad != E:
        out = out[:M, :E]
    return out


# ---------------------------------------------------------------------------
# PatchEmbed3D wrapper (layout glue in JAX, matmul in Pallas). jitted so the
# weight reshape/transpose, bf16 casts and padding fuse around the pallas_call
# instead of being separate eager HBM passes per forward.
# ---------------------------------------------------------------------------
@functools.partial(jax.jit, static_argnames=("patch_size",))
def patch_embed_3d(x, weight, bias, patch_size):
    """
    x:      (N, C, H, W, D)      -- PyTorch NCHWD conv layout
    weight: (E, C, pH, pW, pD)   -- Conv3d weight
    bias:   (E,)
    returns (N, num_patches, E), num_patches ordered as (gh, gw, gd)
    """
    N, C, H, W, D = x.shape
    pH, pW, pD = patch_size
    E = weight.shape[0]
    Gh, Gw, Gd = H // pH, W // pW, D // pD
    P = Gh * Gw * Gd
    K = C * pH * pW * pD

    # Cast to bf16 BEFORE the patch-extraction shuffle so the transpose pass
    # moves half the bytes; MXU accumulates in f32 inside the kernel.
    # TODO(synk): a channel-last (N,H,W,D,C) input upstream would remove this
    # extra HBM pass entirely.
    xb = x.astype(jnp.bfloat16)
    xp = xb.reshape(N, C, Gh, pH, Gw, pW, Gd, pD)
    xp = xp.transpose(0, 2, 4, 6, 1, 3, 5, 7)          # (N, Gh, Gw, Gd, C, pH, pW, pD)
    xp = xp.reshape(N * P, K)

    w2 = weight.reshape(E, K).T.astype(jnp.bfloat16)   # (K, E)

    out = patch_proj(xp, w2, bias.astype(jnp.float32), out_dtype=x.dtype)
    return out.reshape(N, P, E)


# ---------------------------------------------------------------------------
# Demo / self-check
# ---------------------------------------------------------------------------
if __name__ == "__main__":
    # Small config exercising both M padding (M=24 -> tile 32) and E padding
    # (E=192 -> 256 lanes): img_size=(16,16,8), patch_size=(8,8,4), in_chans=2.
    N, C = 3, 2
    H, W, D = 16, 16, 8
    patch_size = (8, 8, 4)
    E = 192

    key = jax.random.PRNGKey(0)
    kx, kw, kb = jax.random.split(key, 3)
    x = jax.random.normal(kx, (N, C, H, W, D), dtype=jnp.float32)
    weight = jax.random.normal(kw, (E, C) + patch_size, dtype=jnp.float32) * 0.02
    bias = jax.random.normal(kb, (E,), dtype=jnp.float32) * 0.02

    out = jax.block_until_ready(patch_embed_3d(x, weight, bias, patch_size))

    # Reference: strided Conv3d via einsum over extracted patches (f32).
    pH, pW, pD = patch_size
    Gh, Gw, Gd = H // pH, W // pW, D // pD
    xp = x.reshape(N, C, Gh, pH, Gw, pW, Gd, pD).transpose(0, 2, 4, 6, 1, 3, 5, 7)
    xp = xp.reshape(N, Gh * Gw * Gd, C * pH * pW * pD)
    ref = jnp.einsum("npk,ek->npe", xp, weight.reshape(E, -1)) + bias

    assert out.shape == (N, Gh * Gw * Gd, E), out.shape
    assert out.dtype == x.dtype, out.dtype
    max_err = float(jnp.max(jnp.abs(out - ref)))
    # bf16 inputs / f32 accumulation vs f32 reference -> loosened tolerance.
    assert jnp.allclose(out, ref, atol=3e-2, rtol=3e-2), f"mismatch vs reference (max abs err {max_err})"
    print("KERNEL_OK")
</pallas_src>

<mosaic_0001>
module attributes {stable_mosaic.version = 11 : i64} {
  func.func @_patch_proj_kernel(%arg0: i32, %arg1: i32, %arg2: memref<32x512xbf16, #tpu.memory_space<vmem>>, %arg3: memref<512x256xbf16, #tpu.memory_space<vmem>>, %arg4: memref<1x256xf32, #tpu.memory_space<vmem>>, %arg5: memref<32x256xf32, #tpu.memory_space<vmem>>) attributes {dimension_semantics = [#tpu.dimension_semantics<parallel>, #tpu.dimension_semantics<parallel>], iteration_bounds = array<i64: 1, 1>, scalar_prefetch = 0 : i64, scratch_operands = 0 : i64, tpu.core_type = #tpu.core_type<tc>, window_params = [{transform_indices = @transform_0, window_bounds = array<i64: 32, 512>}, {transform_indices = @transform_1, window_bounds = array<i64: 512, 256>}, {transform_indices = @transform_2, window_bounds = array<i64: 1, 256>}, {transform_indices = @transform_3, window_bounds = array<i64: 32, 256>}]} {
    %c0 = arith.constant 0 : index
    %c0_0 = arith.constant 0 : index
    %0 = vector.load %arg2[%c0, %c0_0] : memref<32x512xbf16, #tpu.memory_space<vmem>>, vector<32x512xbf16>
    %c0_1 = arith.constant 0 : index
    %c0_2 = arith.constant 0 : index
    %1 = vector.load %arg3[%c0_1, %c0_2] : memref<512x256xbf16, #tpu.memory_space<vmem>>, vector<512x256xbf16>
    %cst = arith.constant dense<0.000000e+00> : vector<32x256xf32>
    %2 = tpu.matmul %0, %1, %cst {dimension_numbers = #tpu.dot_dimension_numbers<[1], [0], [0], [1], [0, 0, 1, 1], [], []>} : vector<32x512xbf16>, vector<512x256xbf16>, vector<32x256xf32> -> vector<32x256xf32>
    %c0_3 = arith.constant 0 : index
    %c0_4 = arith.constant 0 : index
    %3 = vector.load %arg4[%c0_3, %c0_4] : memref<1x256xf32, #tpu.memory_space<vmem>>, vector<1x256xf32>
    %4 = vector.broadcast %3 : vector<1x256xf32> to vector<32x256xf32>
    %5 = arith.addf %2, %4 : vector<32x256xf32>
    %c0_5 = arith.constant 0 : index
    %c0_6 = arith.constant 0 : index
    %6 = vector.load %arg5[%c0_5, %c0_6] : memref<32x256xf32, #tpu.memory_space<vmem>>, vector<32x256xf32>
    tpu.vector_store %arg5[%c0_5, %c0_6], %5 {strides = array<i32>} : memref<32x256xf32, #tpu.memory_space<vmem>>, vector<32x256xf32>,
    return
  }
  func.func @transform_0(%arg0: i32, %arg1: i32) -> (i32, i32) {
    %c0_i32 = arith.constant 0 : i32
    %c0_i32_0 = arith.constant 0 : i32
    return %arg0, %c0_i32 : i32, i32
  }
  func.func @transform_1(%arg0: i32, %arg1: i32) -> (i32, i32) {
    %c0_i32 = arith.constant 0 : i32
    %c0_i32_0 = arith.constant 0 : i32
    return %c0_i32, %arg1 : i32, i32
  }
  func.func @transform_2(%arg0: i32, %arg1: i32) -> (i32, i32) {
    %c0_i32 = arith.constant 0 : i32
    %c0_i32_0 = arith.constant 0 : i32
    return %c0_i32, %arg1 : i32, i32
  }
  func.func @transform_3(%arg0: i32, %arg1: i32) -> (i32, i32) {
    %c0_i32 = arith.constant 0 : i32
    return %arg0, %arg1 : i32, i32
  }
}

</mosaic_0001>

<bundles_post_ra>
// kernel: patch_embed_3d.1
= control target key start
LH: loop header
LB: loop body
LE: loop exit
PB: predicated region body
PF: predicated region fallthrough
CT: control target
= control target key end

     0   :  { %s1035_s1 = inlined_call_operand.vmem [shape: bf16[512,256], index: 1, kind: input, shape index: {}]   ;;  %s1036_s0 = inlined_call_operand.vmem [shape: bf16[32,512], index: 0, kind: input, shape index: {}]   ;;  %s1037_s2 = inlined_call_operand.vmem [shape: f32[1,256], index: 2, kind: input, shape index: {}]   ;;  %s1038_s3 = inlined_call_operand.vmem [shape: f32[32,256], index: 3, kind: output, shape index: {}]  }
   0x1   :  { %v664_v0 = vld [vmem:[%s1035_s1 + $0x4] ss:$8 sps:$4 sm:$0xff]   ;;  %v668_v2 = vld [vmem:[%s1035_s1] ss:$8 sps:$4 sm:$0xff]   ;;  %v670_v4 = vld [vmem:[%s1035_s1 + $0x14] ss:$8 sps:$4 sm:$0xff]  }
   0x2   :  { %v666_v1 = vld [vmem:[%s1035_s1 + $0x104] ss:$8 sps:$4 sm:$0xff]   ;;  %458 = vmatprep.subr.bf16.mxu1 %v664_v0  ;;  %v669_v3 = vld [vmem:[%s1035_s1 + $0x100] ss:$8 sps:$4 sm:$0xff]   ;;  %v672_v5 = vld [vmem:[%s1035_s1 + $0x114] ss:$8 sps:$4 sm:$0xff]  }
   0x3   :  { %511 = vmatprep.subr.bf16.mxu0 %v666_v1  ;;  %459 = vmatpush1.bf16.msra.mxu1 %v668_v2  ;;  %v674_v6 = vld [vmem:[%s1035_s1 + $0x10] ss:$8 sps:$4 sm:$0xff]   ;;  %v676_v8 = vld [vmem:[%s1035_s1 + $0x24] ss:$8 sps:$4 sm:$0xff]   ;;  %v680_v10 = vld [vmem:[%s1035_s1 + $0x20] ss:$8 sps:$4 sm:$0xff]  }
   0x4   :  { %512 = vmatpush1.bf16.msra.mxu0 %v669_v3  ;;  %460 = vmatprep.subr.bf16.mxu1 %v670_v4  ;;  %v675_v7 = vld [vmem:[%s1035_s1 + $0x110] ss:$8 sps:$4 sm:$0xff]   ;;  %v678_v9 = vld [vmem:[%s1035_s1 + $0x124] ss:$8 sps:$4 sm:$0xff]   ;;  %v681_v11 = vld [vmem:[%s1035_s1 + $0x120] ss:$8 sps:$4 sm:$0xff]  }
   0x5   :  { %513 = vmatprep.subr.bf16.mxu0 %v672_v5  ;;  %v682_v12 = vld [vmem:[%s1035_s1 + $0x34] ss:$8 sps:$4 sm:$0xff]   ;;  %v686_v14 = vld [vmem:[%s1035_s1 + $0x30] ss:$8 sps:$4 sm:$0xff]   ;;  %v688_v16 = vld [vmem:[%s1035_s1 + $0x44] ss:$8 sps:$4 sm:$0xff]  }
   0x6   :  { %v684_v13 = vld [vmem:[%s1035_s1 + $0x134] ss:$8 sps:$4 sm:$0xff]   ;;  %v687_v15 = vld [vmem:[%s1035_s1 + $0x130] ss:$8 sps:$4 sm:$0xff]   ;;  %v690_v17 = vld [vmem:[%s1035_s1 + $0x144] ss:$8 sps:$4 sm:$0xff]  }
   0x7   :  { %461 = vmatpush1.bf16.msra.mxu1 %v674_v6  ;;  %v692_v18 = vld [vmem:[%s1035_s1 + $0x40] ss:$8 sps:$4 sm:$0xff]   ;;  %v694_v20 = vld [vmem:[%s1035_s1 + $0x54] ss:$8 sps:$4 sm:$0xff]   ;;  %v698_v22 = vld [vmem:[%s1035_s1 + $0x50] ss:$8 sps:$4 sm:$0xff]  }
   0x8   :  { %514 = vmatpush1.bf16.msra.mxu0 %v675_v7  ;;  %462 = vmatprep.subr.bf16.mxu1 %v676_v8  ;;  %v693_v19 = vld [vmem:[%s1035_s1 + $0x140] ss:$8 sps:$4 sm:$0xff]   ;;  %v696_v21 = vld [vmem:[%s1035_s1 + $0x154] ss:$8 sps:$4 sm:$0xff]   ;;  %v699_v23 = vld [vmem:[%s1035_s1 + $0x150] ss:$8 sps:$4 sm:$0xff]   ;;  %v88_v8 = vlaneseq }
   0x9   :  { %515 = vmatprep.subr.bf16.mxu0 %v678_v9  ;;  %v700_v24 = vld [vmem:[%s1035_s1 + $0x64] ss:$8 sps:$4 sm:$0xff]   ;;  %v704_v26 = vld [vmem:[%s1035_s1 + $0x60] ss:$8 sps:$4 sm:$0xff]   ;;  %v706_v28 = vld [vmem:[%s1035_s1 + $0x74] ss:$8 sps:$4 sm:$0xff]  }
   0xa   :  { %v702_v25 = vld [vmem:[%s1035_s1 + $0x164] ss:$8 sps:$4 sm:$0xff]   ;;  %v705_v27 = vld [vmem:[%s1035_s1 + $0x160] ss:$8 sps:$4 sm:$0xff]   ;;  %v708_v29 = vld [vmem:[%s1035_s1 + $0x174] ss:$8 sps:$4 sm:$0xff]  }
   0xb   :  { %463 = vmatpush1.bf16.msra.mxu1 %v680_v10  ;;  %v710_v30 = vld [vmem:[%s1035_s1 + $0x70] ss:$8 sps:$4 sm:$0xff]   ;;  %v712_v32 = vld [vmem:[%s1035_s1 + $0x84] ss:$8 sps:$4 sm:$0xff]   ;;  %v716_v34 = vld [vmem:[%s1035_s1 + $0x80] ss:$8 sps:$4 sm:$0xff]  }
   0xc   :  { %516 = vmatpush1.bf16.msra.mxu0 %v681_v11  ;;  %464 = vmatprep.subr.bf16.mxu1 %v682_v12  ;;  %v711_v31 = vld [vmem:[%s1035_s1 + $0x170] ss:$8 sps:$4 sm:$0xff]   ;;  %v714_v33 = vld [vmem:[%s1035_s1 + $0x184] ss:$8 sps:$4 sm:$0xff]   ;;  %v717_v35 = vld [vmem:[%s1035_s1 + $0x180] ss:$8 sps:$4 sm:$0xff]  }
   0xd   :  { %517 = vmatprep.subr.bf16.mxu0 %v684_v13  ;;  %v718_v36 = vld [vmem:[%s1035_s1 + $0x94] ss:$8 sps:$4 sm:$0xff]   ;;  %v722_v38 = vld [vmem:[%s1035_s1 + $0x90] ss:$8 sps:$4 sm:$0xff]   ;;  %v724_v40 = vld [vmem:[%s1035_s1 + $0xa4] ss:$8 sps:$4 sm:$0xff]  }
   0xe   :  { %v720_v37 = vld [vmem:[%s1035_s1 + $0x194] ss:$8 sps:$4 sm:$0xff]   ;;  %v723_v39 = vld [vmem:[%s1035_s1 + $0x190] ss:$8 sps:$4 sm:$0xff]   ;;  %v726_v41 = vld [vmem:[%s1035_s1 + $0x1a4] ss:$8 sps:$4 sm:$0xff]  }
   0xf   :  { %465 = vmatpush1.bf16.msra.mxu1 %v686_v14  ;;  %v728_v42 = vld [vmem:[%s1035_s1 + $0xa0] ss:$8 sps:$4 sm:$0xff]   ;;  %v730_v44 = vld [vmem:[%s1035_s1 + $0xb4] ss:$8 sps:$4 sm:$0xff]   ;;  %v734_v46 = vld [vmem:[%s1035_s1 + $0xb0] ss:$8 sps:$4 sm:$0xff]  }
  0x10   :  { %518 = vmatpush1.bf16.msra.mxu0 %v687_v15  ;;  %466 = vmatprep.subr.bf16.mxu1 %v688_v16  ;;  %v729_v43 = vld [vmem:[%s1035_s1 + $0x1a0] ss:$8 sps:$4 sm:$0xff]   ;;  %v732_v45 = vld [vmem:[%s1035_s1 + $0x1b4] ss:$8 sps:$4 sm:$0xff]   ;;  %v735_v47 = vld [vmem:[%s1035_s1 + $0x1b0] ss:$8 sps:$4 sm:$0xff]  }
  0x11   :  { %519 = vmatprep.subr.bf16.mxu0 %v690_v17  ;;  %v736_v48 = vld [vmem:[%s1035_s1 + $0xc4] ss:$8 sps:$4 sm:$0xff]   ;;  %v740_v52 = vld [vmem:[%s1035_s1 + $0xc0] ss:$8 sps:$4 sm:$0xff]   ;;  %v742_v54 = vld [vmem:[%s1035_s1 + $0xd4] ss:$8 sps:$4 sm:$0xff]  }
  0x12   :  { %v762_v49 = vld [vmem:[%s1036_s0 + $0x4] ss:$16 sps:$4 sm:$0xff]   ;;  %v765_v51 = vld [vmem:[%s1036_s0 + $0xc] ss:$16 sps:$4 sm:$0xff]   ;;  %v741_v53 = vld [vmem:[%s1035_s1 + $0x1c0] ss:$8 sps:$4 sm:$0xff]  }
  0x13   :  { %467 = vmatpush1.bf16.msra.mxu1 %v692_v18  ;;  %v738_v50 = vld [vmem:[%s1035_s1 + $0x1c4] ss:$8 sps:$4 sm:$0xff]   ;;  %490 = vmatprep.mubr.bf16.mxu1 %v762_v49  ;;  %v744_v55 = vld [vmem:[%s1035_s1 + $0x1d4] ss:$8 sps:$4 sm:$0xff]   ;;  %v746_v56 = vld [vmem:[%s1035_s1 + $0xd0] ss:$8 sps:$4 sm:$0xff]  }
  0x14   :  { %520 = vmatpush1.bf16.msra.mxu0 %v693_v19  ;;  %468 = vmatprep.subr.bf16.mxu1 %v694_v20  ;;  %v747_v57 = vld [vmem:[%s1035_s1 + $0x1d0] ss:$8 sps:$4 sm:$0xff]   ;;  %v748_v58 = vld [vmem:[%s1035_s1 + $0xe4] ss:$8 sps:$4 sm:$0xff]   ;;  %v752_v60 = vld [vmem:[%s1035_s1 + $0xe0] ss:$8 sps:$4 sm:$0xff]  }
  0x15   :  { %521 = vmatprep.subr.bf16.mxu0 %v696_v21  ;;  %543 = vmatprep.mubr.bf16.mxu0 %v765_v51  ;;  %v750_v59 = vld [vmem:[%s1035_s1 + $0x1e4] ss:$8 sps:$4 sm:$0xff]   ;;  %v753_v61 = vld [vmem:[%s1035_s1 + $0x1e0] ss:$8 sps:$4 sm:$0xff]   ;;  %v754_v62 = vld [vmem:[%s1035_s1 + $0xf4] ss:$8 sps:$4 sm:$0xff]  }
  0x16   :  { %v756_v63 = vld [vmem:[%s1035_s1 + $0x1f4] ss:$8 sps:$4 sm:$0xff]   ;;  %v758_v0 = vld [vmem:[%s1035_s1 + $0xf0] ss:$8 sps:$4 sm:$0xff]   ;;  %v89_v9 = vshrl.u32 %v88_v8, 7 }
  0x17   :  { %469 = vmatpush1.bf16.msra.mxu1 %v698_v22  ;;  %v759_v1 = vld [vmem:[%s1035_s1 + $0x1f0] ss:$8 sps:$4 sm:$0xff]   ;;  %v766_v4 = vld [vmem:[%s1036_s0 + $0x24] ss:$16 sps:$4 sm:$0xff]   ;;  %v768_v5 = vld [vmem:[%s1036_s0 + $0x2c] ss:$16 sps:$4 sm:$0xff]  }
  0x18   :  { %522 = vmatpush1.bf16.msra.mxu0 %v699_v23  ;;  %470 = vmatprep.subr.bf16.mxu1 %v700_v24  ;;  %v760_v2 = vld [vmem:[%s1036_s0] ss:$16 sps:$4 sm:$0xff]   ;;  %v763_v3 = vld [vmem:[%s1036_s0 + $0x8] ss:$16 sps:$4 sm:$0xff]   ;;  %v90_v10 = vsub.s32 0, %v89_v9  ;;  %v94_v12 = vsub.s32 1, %v89_v9 }
  0x19   :  { %523 = vmatprep.subr.bf16.mxu0 %v702_v25  ;;  %v770_v6 = vld [vmem:[%s1036_s0 + $0x20] ss:$16 sps:$4 sm:$0xff]   ;;  %v771_v7 = vld [vmem:[%s1036_s0 + $0x28] ss:$16 sps:$4 sm:$0xff]  }
  0x1a   :  { %v86_v11 = vld [vmem:[%s1037_s2] sm:$0x3] }
  0x1b   :  { %471 = vmatpush1.bf16.msra.mxu1 %v704_v26  ;;  %v91_v13 = vrot.slane %v86_v11, %v90_v10  ;;  %v95_v14 = vrot.slane %v86_v11, %v94_v12 }
  0x1c   :  { %524 = vmatpush1.bf16.msra.mxu0 %v705_v27  ;;  %472 = vmatprep.subr.bf16.mxu1 %v706_v28 }
  0x1d   :  { %525 = vmatprep.subr.bf16.mxu0 %v708_v29 }
  0x1f   :  { %473 = vmatpush1.bf16.msra.mxu1 %v710_v30 }
  0x20   :  { %526 = vmatpush1.bf16.msra.mxu0 %v711_v31  ;;  %474 = vmatprep.subr.bf16.mxu1 %v712_v32 }
  0x21   :  { %527 = vmatprep.subr.bf16.mxu0 %v714_v33 }
  0x23   :  { %475 = vmatpush1.bf16.msra.mxu1 %v716_v34 }
  0x24   :  { %528 = vmatpush1.bf16.msra.mxu0 %v717_v35  ;;  %476 = vmatprep.subr.bf16.mxu1 %v718_v36 }
  0x25   :  { %529 = vmatprep.subr.bf16.mxu0 %v720_v37 }
  0x27   :  { %477 = vmatpush1.bf16.msra.mxu1 %v722_v38 }
  0x28   :  { %530 = vmatpush1.bf16.msra.mxu0 %v723_v39  ;;  %478 = vmatprep.subr.bf16.mxu1 %v724_v40 }
  0x29   :  { %531 = vmatprep.subr.bf16.mxu0 %v726_v41 }
  0x2b   :  { %479 = vmatpush1.bf16.msra.mxu1 %v728_v42 }
  0x2c   :  { %532 = vmatpush1.bf16.msra.mxu0 %v729_v43  ;;  %480 = vmatprep.subr.bf16.mxu1 %v730_v44 }
  0x2d   :  { %533 = vmatprep.subr.bf16.mxu0 %v732_v45 }
  0x2f   :  { %481 = vmatpush1.bf16.msra.mxu1 %v734_v46 }
  0x30   :  { %534 = vmatpush1.bf16.msra.mxu0 %v735_v47  ;;  %482 = vmatprep.subr.bf16.mxu1 %v736_v48 }
  0x31   :  { %535 = vmatprep.subr.bf16.mxu0 %v738_v50 }
  0x33   :  { %483 = vmatpush1.bf16.msra.mxu1 %v740_v52 }
  0x34   :  { %536 = vmatpush1.bf16.msra.mxu0 %v741_v53  ;;  %484 = vmatprep.subr.bf16.mxu1 %v742_v54 }
  0x35   :  { %537 = vmatprep.subr.bf16.mxu0 %v744_v55 }
  0x37   :  { %485 = vmatpush1.bf16.msra.mxu1 %v746_v56 }
  0x38   :  { %538 = vmatpush1.bf16.msra.mxu0 %v747_v57  ;;  %486 = vmatprep.subr.bf16.mxu1 %v748_v58 }
  0x39   :  { %539 = vmatprep.subr.bf16.mxu0 %v750_v59 }
  0x3b   :  { %487 = vmatpush1.bf16.msra.mxu1 %v752_v60 }
  0x3c   :  { %540 = vmatpush1.bf16.msra.mxu0 %v753_v61  ;;  %488 = vmatprep.subr.bf16.mxu1 %v754_v62 }
  0x3d   :  { %541 = vmatprep.subr.bf16.mxu0 %v756_v63 }
  0x3f   :  { %489 = vmatpush1.bf16.msra.mxu1 %v758_v0 }
  0x40   :  { %542 = vmatpush1.bf16.msra.mxu0 %v759_v1 }
  0x42   :  { %491 = vmatmul.mubr.bf16.vlgmr.msra.gmra.mrb[0].mxu1 %v760_v2 }
  0x43   :  { %544 = vmatmul.mubr.bf16.vlgmr.msra.gmra.mrb[0].mxu0 %v763_v3  ;;  %500 = vmatprep.mubr.bf16.mxu1 %v766_v4 }
  0x44   :  { %553 = vmatprep.mubr.bf16.mxu0 %v768_v5 }
  0x4a   :  { %501 = vmatmul.mubr.bf16.gmra.mrb[4].mxu1 %v770_v6 }
  0x4b   :  { %554 = vmatmul.mubr.bf16.gmra.mrb[4].mxu0 %v771_v7 }
 0x115   :  { %v492_v15 = vpop.f32.mrb[0].mxu1 }
 0x116   :  { %v545_v16 = vpop.f32.mrb[0].mxu0  ;;  %v493_v17 = vadd.f32 %v492_v15, %v91_v13  ;;  %v494_v18 = vpop.f32.mrb[1].mxu1 }
 0x117   :  { %v547_v19 = vpop.f32.mrb[1].mxu0  ;;  %v495_v20 = vadd.f32 %v494_v18, %v95_v14  ;;  %v496_v21 = vpop.f32.mrb[2].mxu1 }
 0x118   :  { %v549_v22 = vpop.f32.mrb[2].mxu0  ;;  %v546_v23 = vadd.f32 %v545_v16, %v493_v17  ;;  %v497_v24 = vadd.f32 %v496_v21, %v91_v13  ;;  %v498_v25 = vpop.f32.mrb[3].mxu1 }
 0x119   :  { %v551_v26 = vpop.f32.mrb[3].mxu0  ;;  %v548_v27 = vadd.f32 %v547_v19, %v495_v20  ;;  %v499_v28 = vadd.f32 %v498_v25, %v95_v14 }
 0x11a   :  { %564 = vst [vmem:[%s1038_s3] sm:$0xff] %v546_v23  ;;  %v550_v29 = vadd.f32 %v549_v22, %v497_v24 }
 0x11b   :  { %565 = vst [vmem:[%s1038_s3 + $0x8] sm:$0xff] %v548_v27  ;;  %v552_v30 = vadd.f32 %v551_v26, %v499_v28 }
 0x11c   :  { %566 = vst [vmem:[%s1038_s3 + $0x10] sm:$0xff] %v550_v29 }
 0x11d   :  { %567 = vst [vmem:[%s1038_s3 + $0x18] sm:$0xff] %v552_v30  ;;  %v502_v31 = vpop.f32.mrb[4].mxu1 }
 0x11e   :  { %v555_v32 = vpop.f32.mrb[4].mxu0  ;;  %v503_v33 = vadd.f32 %v502_v31, %v91_v13  ;;  %v504_v34 = vpop.f32.mrb[5].mxu1 }
 0x11f   :  { %v557_v35 = vpop.f32.mrb[5].mxu0  ;;  %v505_v36 = vadd.f32 %v504_v34, %v95_v14  ;;  %v506_v37 = vpop.f32.mrb[6].mxu1 }
 0x120   :  { %v559_v38 = vpop.f32.mrb[6].mxu0  ;;  %v556_v39 = vadd.f32 %v555_v32, %v503_v33  ;;  %v507_v40 = vadd.f32 %v506_v37, %v91_v13  ;;  %v508_v41 = vpop.f32.mrb[7].mxu1 }
 0x121   :  { %v561_v42 = vpop.f32.mrb[7].mxu0  ;;  %v558_v43 = vadd.f32 %v557_v35, %v505_v36  ;;  %v509_v44 = vadd.f32 %v508_v41, %v95_v14 }
 0x122   :  { %568 = vst [vmem:[%s1038_s3 + $0x20] sm:$0xff] %v556_v39  ;;  %v560_v45 = vadd.f32 %v559_v38, %v507_v40 }
 0x123   :  { %569 = vst [vmem:[%s1038_s3 + $0x28] sm:$0xff] %v558_v43  ;;  %v562_v46 = vadd.f32 %v561_v42, %v509_v44 }
 0x124   :  { %570 = vst [vmem:[%s1038_s3 + $0x30] sm:$0xff] %v560_v45 }
 0x125   :  { %571 = vst [vmem:[%s1038_s3 + $0x38] sm:$0xff] %v562_v46 }

</bundles_post_ra>
